<compile_context>
chip_gen: v6e
topology: v6e:2x2x1
jax: 0.10.0
libtpu: 0.0.40
codegen_flags: <defaults>
</compile_context>

<pallas_src>
import functools

import jax
import jax.numpy as jnp
from jax.experimental import pallas as pl
from jax.experimental.pallas import tpu as pltpu

QMIN, QMAX = -128.0, 127.0
_EPS = 1e-8
_STATS_ROWS = 8          # sublane-aligned rows per stats tile (f32 tiling = (8,128))


def _round_up(a, m):
    return (a + m - 1) // m * m


def _choose_tm(M):
    if M >= 1024:
        return 512
    if M >= 256:
        return 256
    return min(256, _round_up(max(M, 1), 16))    # bf16 sublane packing -> multiple of 16


def _choose_tn(N):
    if N % 256 == 0:
        return 256            # full 256-wide MXU tile on v6e/v7x
    if N % 128 == 0:
        return 128
    # TODO(synk): pad ragged N (weights/scales/bias) to a 128 multiple at freeze()
    # for lane-dense stores; a full-N block is always legal so keep it simple here.
    return N


def _choose_tk(K):
    if K <= 1024:
        return K
    for tk in (1024, 512, 256, 128):
        if K % tk == 0:
            return tk
    # TODO(synk): mask ragged K tiles instead of falling back to a full-K block.
    return K


def _row_valid(i, tm, m_total):
    rows = jax.lax.broadcasted_iota(jnp.int32, (tm, 1), 0)
    return (i * tm + rows) < m_total


# --------------------------------------------------------------------------
# Kernel 1 (collect path): fused  y = x @ W^T + b  +  per-channel min/max of x.
# Grid (M, N, K); stats blocks indexed (i, k), recomputed per N tile (idempotent).
# --------------------------------------------------------------------------
def _collect_kernel(x_ref, w_ref, b_ref, y_ref, xmin_ref, xmax_ref, acc_ref,
                    *, m_total, tm):
    i = pl.program_id(0)
    k = pl.program_id(2)

    x = x_ref[...]                                           # (TM, TK) bf16
    valid = _row_valid(i, tm, m_total)                       # (TM, 1) bool
    xf = x.astype(jnp.float32)
    xmin_ref[...] = jnp.broadcast_to(
        jnp.min(jnp.where(valid, xf, jnp.inf), axis=0, keepdims=True), xmin_ref.shape)
    xmax_ref[...] = jnp.broadcast_to(
        jnp.max(jnp.where(valid, xf, -jnp.inf), axis=0, keepdims=True), xmax_ref.shape)

    @pl.when(k == 0)
    def _():
        acc_ref[...] = jnp.zeros_like(acc_ref)

    acc_ref[...] += jnp.dot(x, w_ref[...], preferred_element_type=jnp.float32)

    @pl.when(k == pl.num_programs(2) - 1)
    def _():
        y_ref[...] = (acc_ref[...] + b_ref[...].astype(jnp.float32)).astype(y_ref.dtype)


def _collect_call(x2d, w_T, bias_row, TM):
    M, K = x2d.shape
    N = w_T.shape[1]
    TN, TK = _choose_tn(N), _choose_tk(K)
    nm, nn, nk = pl.cdiv(M, TM), pl.cdiv(N, TN), pl.cdiv(K, TK)
    kernel = functools.partial(_collect_kernel, m_total=M, tm=TM)
    return pl.pallas_call(
        kernel,
        out_shape=(
            jax.ShapeDtypeStruct((M, N), x2d.dtype),
            jax.ShapeDtypeStruct((nm * _STATS_ROWS, K), jnp.float32),
            jax.ShapeDtypeStruct((nm * _STATS_ROWS, K), jnp.float32),
        ),
        grid=(nm, nn, nk),
        in_specs=[
            pl.BlockSpec((TM, TK), lambda i, j, k: (i, k)),
            pl.BlockSpec((TK, TN), lambda i, j, k: (k, j)),
            pl.BlockSpec((1, TN), lambda i, j, k: (0, j)),
        ],
        out_specs=(
            pl.BlockSpec((TM, TN), lambda i, j, k: (i, j)),
            pl.BlockSpec((_STATS_ROWS, TK), lambda i, j, k: (i, k)),
            pl.BlockSpec((_STATS_ROWS, TK), lambda i, j, k: (i, k)),
        ),
        scratch_shapes=[pltpu.VMEM((TM, TN), jnp.float32)],
        compiler_params=pltpu.CompilerParams(
            dimension_semantics=("parallel", "arbitrary", "arbitrary")),
    )(x2d, w_T, bias_row)


# --------------------------------------------------------------------------
# Kernel 2 (frozen path, fully fused): quant + stats + matmul + post-scale.
# Used when TK == K (single K tile) and N needs <= 2 tiles, so the activation
# traverses HBM exactly once.  Only an int8->bf16 cast remains on the weight
# path; scale_w / zp_w are applied after accumulation via the rank-1 correction.
# --------------------------------------------------------------------------
def _fused_frozen_kernel(x_ref, wq_ref, invq_ref, sa_ref, za_ref,
                         sw_ref, swzw_ref, b_ref,
                         y_ref, xmin_ref, xmax_ref, *, m_total, tm):
    i = pl.program_id(0)

    x = x_ref[...].astype(jnp.float32)                       # (TM, K)
    za = za_ref[...]                                         # (1, K) f32
    x_q = jnp.clip(jnp.round(x * invq_ref[...]) + za, QMIN, QMAX)
    x_deq = (x_q - za) * sa_ref[...]                         # (TM, K) f32
    x_deq_bf = x_deq.astype(jnp.bfloat16)

    valid = _row_valid(i, tm, m_total)
    xmin_ref[...] = jnp.broadcast_to(
        jnp.min(jnp.where(valid, x_deq, jnp.inf), axis=0, keepdims=True), xmin_ref.shape)
    xmax_ref[...] = jnp.broadcast_to(
        jnp.max(jnp.where(valid, x_deq, -jnp.inf), axis=0, keepdims=True), xmax_ref.shape)

    # row-sum of the same bf16 values that feed the MXU (makes the rank-1
    # zero-point correction exact w.r.t. the accumulated matmul).
    rowsum = jnp.sum(x_deq_bf.astype(jnp.float32), axis=1, keepdims=True)   # (TM, 1)

    acc = jnp.dot(x_deq_bf, wq_ref[...].astype(jnp.bfloat16),
                  preferred_element_type=jnp.float32)        # (TM, TN)
    y = acc * sw_ref[...] - rowsum * swzw_ref[...] + b_ref[...].astype(jnp.float32)
    y_ref[...] = y.astype(y_ref.dtype)


def _fused_frozen_call(x2d, wq_T, invq_row, sa_row, za_row,
                       sw_row, swzw_row, bias_row, TM):
    M, K = x2d.shape
    N = wq_T.shape[1]
    TN = _choose_tn(N)
    nm, nn = pl.cdiv(M, TM), pl.cdiv(N, TN)
    kernel = functools.partial(_fused_frozen_kernel, m_total=M, tm=TM)
    return pl.pallas_call(
        kernel,
        out_shape=(
            jax.ShapeDtypeStruct((M, N), jnp.bfloat16),
            jax.ShapeDtypeStruct((nm * _STATS_ROWS, K), jnp.float32),
            jax.ShapeDtypeStruct((nm * _STATS_ROWS, K), jnp.float32),
        ),
        grid=(nm, nn),
        in_specs=[
            pl.BlockSpec((TM, K), lambda i, j: (i, 0)),      # x tile (bf16)
            pl.BlockSpec((K, TN), lambda i, j: (0, j)),      # weight_int^T tile (int8)
            pl.BlockSpec((1, K), lambda i, j: (0, 0)),       # inv_qscale
            pl.BlockSpec((1, K), lambda i, j: (0, 0)),       # scale_a
            pl.BlockSpec((1, K), lambda i, j: (0, 0)),       # zp_a (f32)
            pl.BlockSpec((1, TN), lambda i, j: (0, j)),      # scale_w
            pl.BlockSpec((1, TN), lambda i, j: (0, j)),      # scale_w * zp_w
            pl.BlockSpec((1, TN), lambda i, j: (0, j)),      # bias
        ],
        out_specs=(
            pl.BlockSpec((TM, TN), lambda i, j: (i, j)),
            pl.BlockSpec((_STATS_ROWS, K), lambda i, j: (i, 0)),
            pl.BlockSpec((_STATS_ROWS, K), lambda i, j: (i, 0)),
        ),
        compiler_params=pltpu.CompilerParams(
            dimension_semantics=("parallel", "arbitrary")),
    )(x2d, wq_T, invq_row, sa_row, za_row, sw_row, swzw_row, bias_row)


# --------------------------------------------------------------------------
# Kernel 3 (frozen path, split, stage 1): K-tiled quant + stats + row-sum.
# Emits x_deq (bf16), per-channel min/max tiles and rowsum(x_deq) per row
# (accumulated across K tiles via an output block resident on the K axis).
# --------------------------------------------------------------------------
def _quant_stats_kernel(x_ref, invq_ref, sa_ref, za_ref,
                        xdeq_ref, xmin_ref, xmax_ref, rowsum_ref,
                        *, m_total, tm):
    i = pl.program_id(0)
    k = pl.program_id(1)

    x = x_ref[...].astype(jnp.float32)                       # (TM, TK)
    za = za_ref[...]
    x_q = jnp.clip(jnp.round(x * invq_ref[...]) + za, QMIN, QMAX)
    x_deq = (x_q - za) * sa_ref[...]
    x_deq_bf = x_deq.astype(jnp.bfloat16)
    xdeq_ref[...] = x_deq_bf

    valid = _row_valid(i, tm, m_total)
    xmin_ref[...] = jnp.broadcast_to(
        jnp.min(jnp.where(valid, x_deq, jnp.inf), axis=0, keepdims=True), xmin_ref.shape)
    xmax_ref[...] = jnp.broadcast_to(
        jnp.max(jnp.where(valid, x_deq, -jnp.inf), axis=0, keepdims=True), xmax_ref.shape)

    @pl.when(k == 0)
    def _():
        rowsum_ref[...] = jnp.zeros_like(rowsum_ref)
    rowsum_ref[...] += jnp.sum(x_deq_bf.astype(jnp.float32), axis=1, keepdims=True)


def _quant_stats_call(x2d, invq_row, sa_row, za_row, TM):
    M, K = x2d.shape
    TK = _choose_tk(K)
    nm, nk = pl.cdiv(M, TM), pl.cdiv(K, TK)
    kernel = functools.partial(_quant_stats_kernel, m_total=M, tm=TM)
    return pl.pallas_call(
        kernel,
        out_shape=(
            jax.ShapeDtypeStruct((M, K), jnp.bfloat16),
            jax.ShapeDtypeStruct((nm * _STATS_ROWS, K), jnp.float32),
            jax.ShapeDtypeStruct((nm * _STATS_ROWS, K), jnp.float32),
            jax.ShapeDtypeStruct((M, 1), jnp.float32),
        ),
        grid=(nm, nk),
        in_specs=[
            pl.BlockSpec((TM, TK), lambda i, k: (i, k)),
            pl.BlockSpec((1, TK), lambda i, k: (0, k)),
            pl.BlockSpec((1, TK), lambda i, k: (0, k)),
            pl.BlockSpec((1, TK), lambda i, k: (0, k)),
        ],
        out_specs=(
            pl.BlockSpec((TM, TK), lambda i, k: (i, k)),
            pl.BlockSpec((_STATS_ROWS, TK), lambda i, k: (i, k)),
            pl.BlockSpec((_STATS_ROWS, TK), lambda i, k: (i, k)),
            pl.BlockSpec((TM, 1), lambda i, k: (i, 0)),      # resident across k
        ),
        compiler_params=pltpu.CompilerParams(
            dimension_semantics=("parallel", "arbitrary")),
    )(x2d, invq_row, sa_row, za_row)


# --------------------------------------------------------------------------
# Kernel 4 (frozen path, split, stage 2): matmul with the weight dequant
# factored out of the K loop.  In-loop work on the weight path is a single
# int8->bf16 cast feeding the MXU; scale/zero-point applied at finalize.
# --------------------------------------------------------------------------
def _matmul_postscale_kernel(xdeq_ref, wq_ref, rowsum_ref, sw_ref, swzw_ref, b_ref,
                             y_ref, acc_ref):
    @pl.when(pl.program_id(2) == 0)
    def _():
        acc_ref[...] = jnp.zeros_like(acc_ref)

    acc_ref[...] += jnp.dot(xdeq_ref[...], wq_ref[...].astype(jnp.bfloat16),
                            preferred_element_type=jnp.float32)

    @pl.when(pl.program_id(2) == pl.num_programs(2) - 1)
    def _():
        y = (acc_ref[...] * sw_ref[...]
             - rowsum_ref[...] * swzw_ref[...]
             + b_ref[...].astype(jnp.float32))
        y_ref[...] = y.astype(y_ref.dtype)


def _matmul_postscale_call(xdeq, wq_T, rowsum, sw_row, swzw_row, bias_row, TM):
    M, K = xdeq.shape
    N = wq_T.shape[1]
    TN, TK = _choose_tn(N), _choose_tk(K)
    nm, nn, nk = pl.cdiv(M, TM), pl.cdiv(N, TN), pl.cdiv(K, TK)
    return pl.pallas_call(
        _matmul_postscale_kernel,
        out_shape=jax.ShapeDtypeStruct((M, N), jnp.bfloat16),
        grid=(nm, nn, nk),
        in_specs=[
            pl.BlockSpec((TM, TK), lambda i, j, k: (i, k)),   # x_deq tile (bf16)
            pl.BlockSpec((TK, TN), lambda i, j, k: (k, j)),   # weight_int^T tile (int8)
            pl.BlockSpec((TM, 1), lambda i, j, k: (i, 0)),    # rowsum(x_deq)
            pl.BlockSpec((1, TN), lambda i, j, k: (0, j)),    # scale_w
            pl.BlockSpec((1, TN), lambda i, j, k: (0, j)),    # scale_w * zp_w
            pl.BlockSpec((1, TN), lambda i, j, k: (0, j)),    # bias
        ],
        out_specs=pl.BlockSpec((TM, TN), lambda i, j, k: (i, j)),
        scratch_shapes=[pltpu.VMEM((TM, TN), jnp.float32)],
        compiler_params=pltpu.CompilerParams(
            dimension_semantics=("parallel", "parallel", "arbitrary")),
    )(xdeq, wq_T, rowsum, sw_row, swzw_row, bias_row)


# --------------------------------------------------------------------------
# Module wrapper (calibration bookkeeping / freeze() is host-side plain JAX)
# --------------------------------------------------------------------------
def _as_int_timestep(timestep):
    if isinstance(timestep, int):
        return timestep
    arr = jnp.asarray(timestep).reshape(-1)
    return int(arr[0])


class FakeQuantLinear:
    def __init__(self, in_features, out_features, bias=True,
                 dtype=jnp.bfloat16, R_trunc=None, key=None):
        if key is None:
            key = jax.random.PRNGKey(0)
        self.in_features = in_features
        self.out_features = out_features
        self.dtype = dtype
        self.R_trunc = R_trunc
        self.weight = jax.random.normal(
            key, (out_features, in_features), dtype=jnp.float32).astype(dtype)
        self.weight_T = jnp.transpose(self.weight)                        # (K, N), built once
        self.bias = jnp.zeros((out_features,), dtype=dtype) if bias else None
        b = self.bias if self.bias is not None else jnp.zeros((out_features,), dtype)
        self._bias_row = b.reshape(1, -1)
        self.weight_scale = jnp.ones((out_features,), jnp.float32)
        self.weight_zero_point = jnp.zeros((out_features,), jnp.int32)
        self.weight_int = jnp.zeros((out_features, in_features), jnp.int8)
        self.weight_int_T = jnp.zeros((in_features, out_features), jnp.int8)
        self._sw_row = jnp.ones((1, out_features), jnp.float32)
        self._swzw_row = jnp.zeros((1, out_features), jnp.float32)
        self.act_stats = {}
        self.act_qparams = {}
        self.r_s = jnp.ones((in_features,), jnp.float32)
        self.collecting = True

    # ---------------- stats bookkeeping ----------------
    def _update_stats(self, t, xmin, xmax):
        if t not in self.act_stats:
            self.act_stats[t] = {'min': xmin, 'max': xmax}
        else:
            s = self.act_stats[t]
            s['min'] = jnp.minimum(s['min'], xmin)
            s['max'] = jnp.maximum(s['max'], xmax)

    # ---------------- forward ----------------
    def forward(self, x, timestep):
        timestep = _as_int_timestep(timestep)
        lead = x.shape[:-1]
        K = x.shape[-1]
        x2d = x.reshape(-1, K).astype(self.dtype)
        M = x2d.shape[0]
        TM = _choose_tm(M)

        if self.collecting:
            y, xmin_t, xmax_t = _collect_call(x2d, self.weight_T, self._bias_row, TM)
            self._update_stats(timestep,
                               jnp.min(xmin_t, axis=0),
                               jnp.max(xmax_t, axis=0))
            return y.reshape(*lead, self.out_features)

        if timestep not in self.act_qparams:
            raise KeyError(f'No qparams for timestep={timestep}. Did you freeze()?')
        qp = self.act_qparams[timestep]

        N = self.out_features
        TN, TK = _choose_tn(N), _choose_tk(K)
        nn = pl.cdiv(N, TN)

        if TK == K and K <= 1024 and nn <= 2:
            # Fully fused path: x is read from HBM exactly once.
            TMf = min(TM, 256)       # bound in-kernel f32 temporaries (VMEM headroom)
            y, xmin_t, xmax_t = _fused_frozen_call(
                x2d, self.weight_int_T,
                qp['inv_qscale_row'], qp['scale_row'], qp['zp_row'],
                self._sw_row, self._swzw_row, self._bias_row, TMf)
        else:
            # Split path: quant/stats once per element, then post-scaled matmul.
            xdeq, xmin_t, xmax_t, rowsum = _quant_stats_call(
                x2d, qp['inv_qscale_row'], qp['scale_row'], qp['zp_row'], TM)
            y = _matmul_postscale_call(
                xdeq, self.weight_int_T, rowsum,
                self._sw_row, self._swzw_row, self._bias_row, TM)

        self._update_stats(timestep,
                           jnp.min(xmin_t, axis=0),
                           jnp.max(xmax_t, axis=0))
        return y.reshape(*lead, N).astype(self.dtype)

    # ---------------- freeze (calibration-time parameter setup) ----------------
    def freeze(self):
        qmin, qmax = QMIN, QMAX
        all_ts = sorted(self.act_stats.keys())
        numer = jnp.zeros((self.in_features,), jnp.float32)
        denom = jnp.zeros((self.in_features,), jnp.float32)
        for t in all_ts:
            mn = self.act_stats[t]['min'].astype(jnp.float32)
            mx = self.act_stats[t]['max'].astype(jnp.float32)
            peaks = jnp.maximum(jnp.abs(mx), jnp.abs(mn))
            s_tar = jnp.maximum(jnp.min(peaks), _EPS)
            r_t = peaks / s_tar
            numer = numer + r_t * peaks
            denom = denom + peaks
        r_s = numer / jnp.maximum(denom, _EPS)
        if self.R_trunc is not None:
            r_s = jnp.minimum(r_s, self.R_trunc)
        r_s = jnp.clip(r_s, 1.0, 100.0)
        self.r_s = r_s

        # weight reparameterization + int8 quantization (per output channel)
        W_rep = self.weight.astype(jnp.float32) * r_s
        w_min = jnp.min(W_rep, axis=1)
        w_max = jnp.max(W_rep, axis=1)
        scale_w = jnp.maximum((w_max - w_min) / (qmax - qmin), _EPS)
        zp_w = jnp.clip(jnp.round(qmin - w_min / scale_w), qmin, qmax).astype(jnp.int32)
        W_q = jnp.clip(jnp.round(W_rep / scale_w[:, None]) + zp_w[:, None].astype(jnp.float32),
                       qmin, qmax).astype(jnp.int8)
        self.weight_scale = scale_w
        self.weight_zero_point = zp_w
        self.weight_int = W_q
        self.weight_int_T = jnp.transpose(W_q)                    # (K, N), stored once
        self._sw_row = scale_w.reshape(1, -1)
        self._swzw_row = (scale_w * zp_w.astype(jnp.float32)).reshape(1, -1)

        # per-timestep activation qparams, plus kernel-ready rows
        for t in all_ts:
            mn = self.act_stats[t]['min'].astype(jnp.float32) / r_s
            mx = self.act_stats[t]['max'].astype(jnp.float32) / r_s
            scale_a = jnp.maximum((mx - mn) / (qmax - qmin), _EPS)
            zp_a = jnp.clip(jnp.round(qmin - mn / scale_a), qmin, qmax).astype(jnp.int32)
            self.act_qparams[t] = {
                'scale': scale_a,
                'zero_point': zp_a,
                'scale_row': scale_a.reshape(1, -1),
                'zp_row': zp_a.astype(jnp.float32).reshape(1, -1),
                # folds x / r_s / scale_a into a single multiply inside the kernel
                'inv_qscale_row': (1.0 / (r_s * scale_a)).reshape(1, -1),
            }
        self.collecting = False


# --------------------------------------------------------------------------
# Plain-JAX reference of the frozen forward (mirrors the PyTorch code path).
# --------------------------------------------------------------------------
def _ref_frozen_forward(layer, x, t):
    qp = layer.act_qparams[t]
    K = layer.in_features
    xf = x.reshape(-1, K).astype(jnp.float32)
    x_rep = xf / layer.r_s
    scale_a = qp['scale']
    zp_a = qp['zero_point'].astype(jnp.float32)
    x_q = jnp.clip(jnp.round(x_rep / scale_a) + zp_a, QMIN, QMAX)
    x_deq = (x_q - zp_a) * scale_a
    w_deq = ((layer.weight_int.astype(jnp.float32)
              - layer.weight_zero_point[:, None].astype(jnp.float32))
             * layer.weight_scale[:, None])
    b = layer.bias.astype(jnp.float32) if layer.bias is not None else 0.0
    return x_deq @ w_deq.T + b


if __name__ == "__main__":
    root = jax.random.PRNGKey(0)
    ks = jax.random.split(root, 10)
    B, S = 2, 8

    # ---- layer 1: K=32, N=64 -> frozen path uses the fully fused kernel ----
    K1, N1 = 32, 64
    layer1 = FakeQuantLinear(K1, N1, bias=True, key=ks[0])

    xc0 = jax.random.normal(ks[1], (B, S, K1)).astype(jnp.bfloat16)
    xc1 = jax.random.normal(ks[2], (B, S, K1)).astype(jnp.bfloat16)
    y_cal = layer1.forward(xc0, 0)
    _ = layer1.forward(xc1, 0)
    jax.block_until_ready(y_cal)
    y_cal_ref = (xc0.reshape(-1, K1).astype(jnp.float32)
                 @ layer1.weight.astype(jnp.float32).T
                 + layer1.bias.astype(jnp.float32))
    d_cal = jnp.max(jnp.abs(y_cal.reshape(-1, N1).astype(jnp.float32) - y_cal_ref))
    tol_cal = 0.05 * jnp.maximum(1.0, jnp.max(jnp.abs(y_cal_ref)))
    assert bool(d_cal <= tol_cal), (float(d_cal), float(tol_cal))

    layer1.freeze()

    x1 = (jax.random.normal(ks[3], (B, S, K1)) * 2.0).astype(jnp.bfloat16)
    y1 = layer1.forward(x1, 0)
    jax.block_until_ready(y1)
    assert y1.shape == (B, S, N1), y1.shape
    assert y1.dtype == jnp.bfloat16, y1.dtype
    y1_ref = _ref_frozen_forward(layer1, x1, 0)
    d1 = jnp.max(jnp.abs(y1.reshape(-1, N1).astype(jnp.float32) - y1_ref))
    tol1 = 0.05 * jnp.maximum(1.0, jnp.max(jnp.abs(y1_ref)))
    assert bool(d1 <= tol1), (float(d1), float(tol1))

    # ragged-M path (M = 15 rows, not a multiple of the 16-row tile) + masked stats
    x_odd = jax.random.normal(ks[4], (3, 5, K1)).astype(jnp.bfloat16)
    y_odd = layer1.forward(x_odd, 0)
    jax.block_until_ready(y_odd)
    assert y_odd.shape == (3, 5, N1), y_odd.shape
    y_odd_ref = _ref_frozen_forward(layer1, x_odd, 0)
    d_odd = jnp.max(jnp.abs(y_odd.reshape(-1, N1).astype(jnp.float32) - y_odd_ref))
    tol_odd = 0.05 * jnp.maximum(1.0, jnp.max(jnp.abs(y_odd_ref)))
    assert bool(d_odd <= tol_odd), (float(d_odd), float(tol_odd))
    assert bool(jnp.all(jnp.isfinite(layer1.act_stats[0]['min'])))
    assert bool(jnp.all(jnp.isfinite(layer1.act_stats[0]['max'])))

    # ---- layer 2: K=128, N=384 -> frozen path uses the split (quant + post-scaled matmul) ----
    K2, N2 = 128, 384
    layer2 = FakeQuantLinear(K2, N2, bias=True, key=ks[5])
    xc2a = jax.random.normal(ks[6], (B, S, K2)).astype(jnp.bfloat16)
    xc2b = jax.random.normal(ks[7], (3, 5, K2)).astype(jnp.bfloat16)   # ragged M in collect
    _ = layer2.forward(xc2a, 7)
    _ = layer2.forward(xc2b, 7)
    layer2.freeze()

    x2 = (jax.random.normal(ks[8], (B, S, K2)) * 1.5).astype(jnp.bfloat16)
    y2 = layer2.forward(x2, 7)
    jax.block_until_ready(y2)
    assert y2.shape == (B, S, N2), y2.shape
    assert y2.dtype == jnp.bfloat16, y2.dtype
    assert bool(jnp.all(jnp.isfinite(y2.astype(jnp.float32))))
    y2_ref = _ref_frozen_forward(layer2, x2, 7)
    d2 = jnp.max(jnp.abs(y2.reshape(-1, N2).astype(jnp.float32) - y2_ref))
    tol2 = 0.05 * jnp.maximum(1.0, jnp.max(jnp.abs(y2_ref)))
    assert bool(d2 <= tol2), (float(d2), float(tol2))

    print("KERNEL_OK")
</pallas_src>

<mosaic_0001>
module attributes {stable_mosaic.version = 11 : i64} {
  func.func @_collect_kernel(%arg0: i32, %arg1: i32, %arg2: i32, %arg3: memref<16x32xbf16, #tpu.memory_space<vmem>>, %arg4: memref<32x64xbf16, #tpu.memory_space<vmem>>, %arg5: memref<1x64xbf16, #tpu.memory_space<vmem>>, %arg6: memref<16x64xbf16, #tpu.memory_space<vmem>>, %arg7: memref<8x32xf32, #tpu.memory_space<vmem>>, %arg8: memref<8x32xf32, #tpu.memory_space<vmem>>, %arg9: memref<16x64xf32, #tpu.memory_space<vmem>>) attributes {dimension_semantics = [#tpu.dimension_semantics<parallel>, #tpu.dimension_semantics<arbitrary>, #tpu.dimension_semantics<arbitrary>], iteration_bounds = array<i64: 1, 1, 1>, scalar_prefetch = 0 : i64, scratch_operands = 1 : i64, tpu.core_type = #tpu.core_type<tc>, window_params = [{transform_indices = @transform_0, window_bounds = array<i64: 16, 32>}, {transform_indices = @transform_1, window_bounds = array<i64: 32, 64>}, {transform_indices = @transform_2, window_bounds = array<i64: 1, 64>}, {transform_indices = @transform_3, window_bounds = array<i64: 16, 64>}, {transform_indices = @transform_4, window_bounds = array<i64: 8, 32>}, {transform_indices = @transform_5, window_bounds = array<i64: 8, 32>}]} {
    %c0 = arith.constant 0 : index
    %c0_0 = arith.constant 0 : index
    %0 = vector.load %arg3[%c0, %c0_0] : memref<16x32xbf16, #tpu.memory_space<vmem>>, vector<16x32xbf16>
    %1 = tpu.iota {dimensions = array<i32: 0>} : vector<16x1xi32>
    %c16_i32 = arith.constant 16 : i32
    %2 = arith.muli %arg0, %c16_i32 : i32
    %3 = vector.broadcast %2 : i32 to vector<16x1xi32>
    %4 = arith.addi %3, %1 : vector<16x1xi32>
    %c16_i32_1 = arith.constant 16 : i32
    %5 = vector.broadcast %c16_i32_1 : i32 to vector<16x1xi32>
    %6 = arith.cmpi slt, %4, %5 : vector<16x1xi32>
    %7 = arith.extf %0 : vector<16x32xbf16> to vector<16x32xf32>
    %cst = arith.constant 0x7F800000 : f32
    %8 = vector.shape_cast %6 : vector<16x1xi1> to vector<16x1xi1>
    %9 = vector.broadcast %8 : vector<16x1xi1> to vector<16x32xi1>
    %10 = vector.broadcast %cst : f32 to vector<16x32xf32>
    %11 = arith.select %9, %7, %10 : vector<16x32xi1>, vector<16x32xf32>
    %cst_2 = arith.constant dense<0x7F800000> : vector<32xf32>
    %12 = vector.multi_reduction <minimumf>, %11, %cst_2 [0] : vector<16x32xf32> to vector<32xf32>
    %13 = vector.shape_cast %12 : vector<32xf32> to vector<1x32xf32>
    %14 = vector.shape_cast %13 : vector<1x32xf32> to vector<1x32xf32>
    %15 = vector.broadcast %14 : vector<1x32xf32> to vector<8x32xf32>
    %c0_3 = arith.constant 0 : index
    %c0_4 = arith.constant 0 : index
    %16 = vector.load %arg7[%c0_3, %c0_4] : memref<8x32xf32, #tpu.memory_space<vmem>>, vector<8x32xf32>
    tpu.vector_store %arg7[%c0_3, %c0_4], %15 {strides = array<i32>} : memref<8x32xf32, #tpu.memory_space<vmem>>, vector<8x32xf32>,
    %cst_5 = arith.constant 0xFF800000 : f32
    %17 = vector.shape_cast %6 : vector<16x1xi1> to vector<16x1xi1>
    %18 = vector.broadcast %17 : vector<16x1xi1> to vector<16x32xi1>
    %19 = vector.broadcast %cst_5 : f32 to vector<16x32xf32>
    %20 = arith.select %18, %7, %19 : vector<16x32xi1>, vector<16x32xf32>
    %cst_6 = arith.constant dense<0xFF800000> : vector<32xf32>
    %21 = vector.multi_reduction <maximumf>, %20, %cst_6 [0] : vector<16x32xf32> to vector<32xf32>
    %22 = vector.shape_cast %21 : vector<32xf32> to vector<1x32xf32>
    %23 = vector.shape_cast %22 : vector<1x32xf32> to vector<1x32xf32>
    %24 = vector.broadcast %23 : vector<1x32xf32> to vector<8x32xf32>
    %c0_7 = arith.constant 0 : index
    %c0_8 = arith.constant 0 : index
    %25 = vector.load %arg8[%c0_7, %c0_8] : memref<8x32xf32, #tpu.memory_space<vmem>>, vector<8x32xf32>
    tpu.vector_store %arg8[%c0_7, %c0_8], %24 {strides = array<i32>} : memref<8x32xf32, #tpu.memory_space<vmem>>, vector<8x32xf32>,
    %c0_i32 = arith.constant 0 : i32
    %26 = arith.cmpi eq, %arg2, %c0_i32 : i32
    %27 = arith.extui %26 : i1 to i32
    %c0_i32_9 = arith.constant 0 : i32
    %28 = arith.cmpi ne, %27, %c0_i32_9 : i32
    scf.if %28 {
      %cst_19 = arith.constant 0.000000e+00 : f32
      %37 = vector.broadcast %cst_19 : f32 to vector<16x64xf32>
      %c0_20 = arith.constant 0 : index
      %c0_21 = arith.constant 0 : index
      %38 = vector.load %arg9[%c0_20, %c0_21] : memref<16x64xf32, #tpu.memory_space<vmem>>, vector<16x64xf32>
      tpu.vector_store %arg9[%c0_20, %c0_21], %37 {strides = array<i32>} : memref<16x64xf32, #tpu.memory_space<vmem>>, vector<16x64xf32>,
    } else {
    }
    %c0_10 = arith.constant 0 : index
    %c0_11 = arith.constant 0 : index
    %29 = vector.load %arg9[%c0_10, %c0_11] : memref<16x64xf32, #tpu.memory_space<vmem>>, vector<16x64xf32>
    %c0_12 = arith.constant 0 : index
    %c0_13 = arith.constant 0 : index
    %30 = vector.load %arg4[%c0_12, %c0_13] : memref<32x64xbf16, #tpu.memory_space<vmem>>, vector<32x64xbf16>
    %cst_14 = arith.constant dense<0.000000e+00> : vector<16x64xf32>
    %31 = tpu.matmul %0, %30, %cst_14 {dimension_numbers = #tpu.dot_dimension_numbers<[1], [0], [0], [1], [0, 0, 1, 1], [], []>} : vector<16x32xbf16>, vector<32x64xbf16>, vector<16x64xf32> -> vector<16x64xf32>
    %32 = arith.addf %29, %31 : vector<16x64xf32>
    %c0_15 = arith.constant 0 : index
    %c0_16 = arith.constant 0 : index
    %33 = vector.load %arg9[%c0_15, %c0_16] : memref<16x64xf32, #tpu.memory_space<vmem>>, vector<16x64xf32>
    tpu.vector_store %arg9[%c0_15, %c0_16], %32 {strides = array<i32>} : memref<16x64xf32, #tpu.memory_space<vmem>>, vector<16x64xf32>,
    %c0_i32_17 = arith.constant 0 : i32
    %34 = arith.cmpi eq, %arg2, %c0_i32_17 : i32
    %35 = arith.extui %34 : i1 to i32
    %c0_i32_18 = arith.constant 0 : i32
    %36 = arith.cmpi ne, %35, %c0_i32_18 : i32
    scf.if %36 {
      %c0_19 = arith.constant 0 : index
      %c0_20 = arith.constant 0 : index
      %37 = vector.load %arg9[%c0_19, %c0_20] : memref<16x64xf32, #tpu.memory_space<vmem>>, vector<16x64xf32>
      %c0_21 = arith.constant 0 : index
      %c0_22 = arith.constant 0 : index
      %38 = vector.load %arg5[%c0_21, %c0_22] : memref<1x64xbf16, #tpu.memory_space<vmem>>, vector<1x64xbf16>
      %39 = arith.extf %38 : vector<1x64xbf16> to vector<1x64xf32>
      %40 = vector.broadcast %39 : vector<1x64xf32> to vector<16x64xf32>
      %41 = arith.addf %37, %40 : vector<16x64xf32>
      %42 = arith.truncf %41 : vector<16x64xf32> to vector<16x64xbf16>
      %c0_23 = arith.constant 0 : index
      %c0_24 = arith.constant 0 : index
      %43 = vector.load %arg6[%c0_23, %c0_24] : memref<16x64xbf16, #tpu.memory_space<vmem>>, vector<16x64xbf16>
      tpu.vector_store %arg6[%c0_23, %c0_24], %42 {strides = array<i32>} : memref<16x64xbf16, #tpu.memory_space<vmem>>, vector<16x64xbf16>,
    } else {
    }
    return
  }
  func.func @transform_0(%arg0: i32, %arg1: i32, %arg2: i32) -> (i32, i32) {
    %c0_i32 = arith.constant 0 : i32
    return %arg0, %arg2 : i32, i32
  }
  func.func @transform_1(%arg0: i32, %arg1: i32, %arg2: i32) -> (i32, i32) {
    %c0_i32 = arith.constant 0 : i32
    return %arg2, %arg1 : i32, i32
  }
  func.func @transform_2(%arg0: i32, %arg1: i32, %arg2: i32) -> (i32, i32) {
    %c0_i32 = arith.constant 0 : i32
    %c0_i32_0 = arith.constant 0 : i32
    return %c0_i32, %arg1 : i32, i32
  }
  func.func @transform_3(%arg0: i32, %arg1: i32, %arg2: i32) -> (i32, i32) {
    %c0_i32 = arith.constant 0 : i32
    return %arg0, %arg1 : i32, i32
  }
  func.func @transform_4(%arg0: i32, %arg1: i32, %arg2: i32) -> (i32, i32) {
    %c0_i32 = arith.constant 0 : i32
    return %arg0, %arg2 : i32, i32
  }
  func.func @transform_5(%arg0: i32, %arg1: i32, %arg2: i32) -> (i32, i32) {
    %c0_i32 = arith.constant 0 : i32
    return %arg0, %arg2 : i32, i32
  }
}

</mosaic_0001>

<bundles_post_ra>
// kernel: tpu_custom_call.1
= control target key start
LH: loop header
LB: loop body
LE: loop exit
PB: predicated region body
PF: predicated region fallthrough
CT: control target
= control target key end

     0   :  { %11 = vsyncpa [#allocation4], 0  ;;  %s455_s0 = inlined_call_operand.hbm [shape: bf16[16,32], index: 0, kind: input, shape index: {}]   ;;  %s456_s1 = inlined_call_operand.hbm [shape: bf16[32,64], index: 1, kind: input, shape index: {}]   ;;  %s457_s2 = inlined_call_operand.vmem [shape: bf16[1,64], index: 2, kind: input, shape index: {}]   ;;  %s458_s3 = inlined_call_operand.hbm [shape: bf16[16,64], index: 3, kind: output, shape index: {0}]   ;;  %s459_s4 = inlined_call_operand.hbm [shape: f32[8,32], index: 4, kind: output, shape index: {1}]   ;;  %s460_s5 = inlined_call_operand.hbm [shape: f32[8,32], index: 5, kind: output, shape index: {2}]  }
   0x1   :  { %12 = vsyncpa [#allocation7], 0 }
   0x2   :  { %13 = vsyncpa [#allocation5], 0 }
   0x3   :  { %14 = vsyncpa [#allocation10], 0  ;;  %s378_s18 = smov [#allocation3]  }
   0x4   :  { %s20_s19 = sshll.u32 %s378_s18, 4  ;;  %s21_s19 = int_to_ptr.vmem [resolvable:$true] %s20_s19 }
   0x5   :  { %s278_s20 = scalar_lea.vmem %s21_s19, 128  ;;  %p283_p1 = scmp.lt.s32.totalorder %s21_s19, %s21_s19 }
   0x6   :  { %p279_p0 = scmp.ne.s32.totalorder %s21_s19, %s278_s20  ;;  %p284_p2 = scmp.lt.s32.totalorder %s278_s20, %s278_s20 }
   0x8   :  { %p285_p3 = por %p284_p2, %p283_p1 }
   0xa   :  { %p286_p4 = pnand %p285_p3, %p279_p0 }
   0xc   :  { %289 = shalt.err (!%p286_p4)
}
   0xd   :  { %s379_s21 = smov 64   ;;  %s380_s22 = smov 4  }
   0xe   :  { %26 = dma.hbm_to_vmem [thread:$0]  %s455_s0, 128, %s21_s19, [#allocation4], %s379_s21, %s379_s21, %s380_s22  }
   0xf   :  { %s381_s25 = smov [#allocation6]  }
  0x10   :  { %s32_s26 = sshll.u32 %s381_s25, 4  ;;  %s33_s26 = int_to_ptr.vmem [resolvable:$true] %s32_s26 }
  0x11   :  { %s298_s27 = scalar_lea.vmem %s33_s26, 256  ;;  %p303_p6 = scmp.lt.s32.totalorder %s33_s26, %s33_s26 }
  0x12   :  { %p299_p5 = scmp.ne.s32.totalorder %s33_s26, %s298_s27  ;;  %p304_p7 = scmp.lt.s32.totalorder %s298_s27, %s298_s27 }
  0x14   :  { %p305_p8 = por %p304_p7, %p303_p6 }
  0x16   :  { %p306_p9 = pnand %p305_p8, %p299_p5 }
  0x18   :  { %309 = shalt.err (!%p306_p9)
}
  0x19   :  { %38 = dma.hbm_to_vmem [thread:$0]  %s456_s1, 256, %s33_s26, [#allocation7], %s379_s21, %s379_s21, %s380_s22  }
  0x1a   :  { %370 = dma.done.wait [#allocation4], 128  }
  0x1b   :  { %371 = vsyncadd [#allocation4], 4294967168 }
  0x1c   :  { %372 = dma.done.wait [#allocation7], 256  }
  0x1d   :  { %373 = vsyncadd [#allocation7], 4294967040  ;;  %vm94_vm0 = vcmask 523264   ;;  %v382_v0 = vmov 0.0   ;;  %vm383_vm1 = vmmov 0   ;;  %v266_v1 = vld [vmem:[#allocation6 + $0x8] sm:$0xff]  }
  0x1e   :  { %95 = vst.msk [vmem:[#allocation2] sm:$0xff] %vm94_vm0, %v382_v0  ;;  %96 = vst.msk [vmem:[#allocation2 + $0x8] sm:$0xff] %vm94_vm0, %v382_v0  ;;  %249 = vmatprep.subr.bf16.mxu0 %v382_v0  ;;  %253 = vmatprep.mubr.msk.bf16.mxu0 %vm383_vm1, %v382_v0  ;;  %v267_v2 = vld [vmem:[#allocation6] sm:$0xff]   ;;  %v48_v3 = vld [vmem:[#allocation3] sm:$0xff]   ;;  %vm67_vm2 = vcmask 261120   ;;  %s384_s0 = smov [#allocation9]  }
  0x1f   :  { %250 = vmatpush3.bf16.msra.mxu0 %v266_v1  ;;  %v59_v4 = vunpack.c.l.bf16 %v48_v3  ;;  %v60_v5 = vunpack.c.h.bf16 %v48_v3  ;;  %s211_s1 = sshll.u32 %s384_s0, 4  ;;  %s385_s30 = smov [#allocation11]   ;;  %s212_s1 = int_to_ptr.vmem [resolvable:$true] %s211_s1 }
  0x20   :  { %251 = vmatprep.subr.bf16.mxu0 %v382_v0  ;;  %s221_s6 = sshll.u32 %s385_s30, 4  ;;  %s310_s7 = scalar_lea.vmem %s212_s1, 128  ;;  %s222_s6 = int_to_ptr.vmem [resolvable:$true] %s221_s6 }
  0x21   :  { %v80_v6 = vsel %vm67_vm2, %v59_v4, -inf  ;;  %v81_v7 = vsel %vm67_vm2, %v60_v5, -inf  ;;  %v68_v8 = vsel %vm67_vm2, %v59_v4, inf  ;;  %v69_v9 = vsel %vm67_vm2, %v60_v5, inf  ;;  %p311_p10 = scmp.ne.s32.totalorder %s212_s1, %s310_s7  ;;  %p315_p11 = scmp.lt.s32.totalorder %s212_s1, %s212_s1 }
  0x22   :  { %v82_v10 = vmax.f32 %v80_v6, %v81_v7  ;;  %v70_v11 = vmin.f32 %v68_v8, %v69_v9  ;;  %p316_p12 = scmp.lt.s32.totalorder %s310_s7, %s310_s7 }
  0x23   :  { %252 = vmatpush3.bf16.msra.mxu0 %v267_v2 }
  0x24   :  { %v71_v12 = vrot.slane %v70_v11, 4  ;;  %v83_v13 = vrot.slane %v82_v10, 4  ;;  %p317_p13 = por %p316_p12, %p315_p11 }
  0x26   :  { %254 = vmatmul.mubr.msk.bf16.vlgmr.msra.gmra.mxu0 %vm67_vm2, %v48_v3  ;;  %v72_v14 = vmin.f32 %v70_v11, %v71_v12  ;;  %v84_v15 = vmax.f32 %v82_v10, %v83_v13  ;;  %p318_p0 = pnand %p317_p13, %p311_p10 }
  0x28   :  { %v73_v16 = vrot.slane %v72_v14, 2  ;;  %v85_v17 = vrot.slane %v84_v15, 2 }
  0x2a   :  { %v74_v18 = vmin.f32 %v72_v14, %v73_v16  ;;  %v86_v19 = vmax.f32 %v84_v15, %v85_v17 }
  0x2c   :  { %v75_v20 = vrot.slane %v74_v18, 1  ;;  %v87_v21 = vrot.slane %v86_v19, 1 }
  0x2e   :  { %v76_v22 = vmin.f32 %v74_v18, %v75_v20  ;;  %v88_v23 = vmax.f32 %v86_v19, %v87_v21 }
  0x30   :  { %77 = vst.msk [vmem:[#allocation9] sm:$0xff] %vm67_vm2, %v76_v22 }
  0x31   :  { %321 = shalt.err (!%p318_p0)
}
  0x32   :  { %214 = dma.vmem_to_hbm [thread:$0]  %s212_s1, 128, %s459_s4, [#allocation10]   ;;  %89 = vst.msk [vmem:[#allocation11] sm:$0xff] %vm67_vm2, %v88_v23 }
  0x33   :  { %s330_s10 = scalar_lea.vmem %s222_s6, 128  ;;  %p335_p2 = scmp.lt.s32.totalorder %s222_s6, %s222_s6 }
  0x34   :  { %p331_p1 = scmp.ne.s32.totalorder %s222_s6, %s330_s10  ;;  %p336_p3 = scmp.lt.s32.totalorder %s330_s10, %s330_s10 }
  0x36   :  { %p337_p4 = por %p336_p3, %p335_p2 }
  0x38   :  { %p338_p5 = pnand %p337_p4, %p331_p1 }
  0x3a   :  { %341 = shalt.err (!%p338_p5)
}
  0x3b   :  { %224 = dma.vmem_to_hbm [thread:$0]  %s222_s6, 128, %s460_s5, [#allocation10]   ;;  %v176_v24 = vlaneseq  ;;  %v97_v25 = vld [vmem:[#allocation2] sm:$0xff]  ;;  %v98_v31 = vld [vmem:[#allocation2 + $0x8] sm:$0xff]  ;;  %vm190_vm3 = vcmask 519168  }
  0x3c   :  { %v174_v28 = vld [vmem:[%s457_s2] sm:$0x1]  ;;  %s386_s5 = smov [#allocation8]  }
  0x3d   :  { %v177_v26 = vshrl.u32 %v176_v24, 7  ;;  %v175_v32 = vunpack.c.l.bf16 %v174_v28  ;;  %s198_s2 = sshll.u32 %s386_s5, 4  ;;  %s199_s2 = int_to_ptr.vmem [resolvable:$true] %s198_s2 }
  0x3e   :  { %s350_s14 = scalar_lea.vmem %s199_s2, 128  ;;  %p355_p7 = scmp.lt.s32.totalorder %s199_s2, %s199_s2 }
  0x3f   :  { %v178_v33 = vsub.s32 0, %v177_v26  ;;  %p351_p6 = scmp.ne.s32.totalorder %s199_s2, %s350_s14  ;;  %p356_p8 = scmp.lt.s32.totalorder %s350_s14, %s350_s14 }
  0x41   :  { %v179_v37 = vrot.slane %v175_v32, %v178_v33  ;;  %p357_p9 = por %p356_p8, %p355_p7 }
  0x43   :  { %p358_p10 = pnand %p357_p9, %p351_p6 }
  0xe6   :  { %v157_v27 = vpop.f32.mrf.mxu0 }
  0xe7   :  { %v164_v29 = vadd.f32 %v157_v27, %v97_v25 }
  0xe8   :  { %v255_v30 = vpop.f32.mrf.mxu0 }
  0xe9   :  { %167 = vst.msk [vmem:[#allocation2] sm:$0xff] %vm94_vm0, %v164_v29 }
  0xea   :  { %v160_v34 = vpop.f32.mrf.mxu0 }
  0xeb   :  { %v165_v35 = vadd.f32 %v160_v34, %v98_v31 }
  0xec   :  { %v256_v36 = vpop.f32.mrf.mxu0 }
  0xed   :  { %168 = vst.msk [vmem:[#allocation2 + $0x8] sm:$0xff] %vm94_vm0, %v165_v35 }
  0xf0   :  { %v172_v38 = vld [vmem:[#allocation2] sm:$0xff] }
  0xf1   :  { %v180_v39 = vadd.f32 %v179_v37, %v172_v38 }
  0xf3   :  { %v244_v40 = vpack.c.bf16 %v180_v39, %v180_v39 }
  0xf4   :  { %v173_v41 = vld [vmem:[#allocation2 + $0x8] sm:$0xff] }
  0xf5   :  { %v181_v42 = vadd.f32 %v179_v37, %v173_v41  ;;  %191 = vst.msk [vmem:[#allocation8] sm:$0xf] %vm190_vm3, %v244_v40 }
  0xf7   :  { %v245_v43 = vpack.c.bf16 %v181_v42, %v181_v42 }
  0xf9   :  { %192 = vst.msk [vmem:[#allocation8 + $0x4] sm:$0xf] %vm190_vm3, %v245_v43 }
  0xfa   :  { %361 = shalt.err (!%p358_p10)
}
  0xfb   :  { %204 = dma.vmem_to_hbm [thread:$0]  %s199_s2, 128, %s458_s3, [#allocation5], %s379_s21, %s379_s21, %s380_s22  }
  0xfc   :  { %374 = dma.done.wait [#allocation5], 128  }
  0xfd   :  { %375 = vsyncadd [#allocation5], 4294967168 }
  0xfe   :  { %376 = dma.done.wait [#allocation10], 256  }
  0xff   :  { %377 = vsyncadd [#allocation10], 4294967040 }
 0x100   :  { %234 = vsyncpa [#allocation4], 1 }
 0x101   :  { %235 = vsyncpa [#allocation7], 1 }
 0x102   :  { %236 = vsyncpa [#allocation5], 1 }
 0x103   :  { %237 = vsyncpa [#allocation10], 1 }

</bundles_post_ra>
